<compile_context>
chip_gen: v7x
topology: tpu7x:2x2x1
jax: 0.10.0
libtpu: 0.0.40
codegen_flags: <defaults>
</compile_context>

<pallas_src>
import jax
import jax.numpy as jnp
from jax.experimental import pallas as pl
from jax.experimental.pallas import tpu as pltpu


def _model_kernel(x1_ref, x2_ref, out_ref):
    # x1_ref: (A1, C)  = x1[:, 0, :]
    # x2_ref: (A2f, C) = x2[:, 0, :]
    # out_ref: (C, A1)
    #
    # Column-combine of v2 = x2.permute(2,1,0) done BEFORE the contraction:
    #   w[c] = x2[0,c] - x2[2,c] - x2[3,c] + x2[5,c]
    # Four sublane-row reads of the single x2 vreg + 3 VPU add/subs.
    w = (x2_ref[0:1, :] - x2_ref[2:3, :]
         - x2_ref[3:4, :] + x2_ref[5:6, :])                   # (1, C)

    # With K == 1 the matmul degenerates to a broadcast multiply (pure VPU).
    v4_ac = x1_ref[...] * w                                   # (A1, C)

    # v4 is (C, A1) in the reference; one in-kernel transpose (single vxpose)
    # followed by one full-block store.
    out_ref[...] = v4_ac.T.astype(out_ref.dtype)              # (C, A1)


def model_forward(x1, x2):
    # x1: (A1, K, C), x2: (A2f, K, C) with K == 1 (the module's shapes).
    A1, K, C = x1.shape
    A2f = x2.shape[0]
    assert K == 1, "kernel specialised to the module's K == 1 contraction"
    # TODO(synk): general-K path would need a (A1,K,C)x(K,C) reduction; not
    # exercised by this module's shapes.
    assert A2f >= 6, "v12[:, :, 5] requires x2 leading dim >= 6"

    # Squeeze the size-1 K dim in the wrapper (free, contiguous reshape) so
    # each kernel input is a single (N, C) vreg-sized block.
    x1_2d = x1.reshape(A1, C)
    x2_2d = x2.reshape(A2f, C)

    out2d = pl.pallas_call(
        _model_kernel,
        out_shape=jax.ShapeDtypeStruct((C, A1), x1.dtype),
        in_specs=[
            pl.BlockSpec(memory_space=pltpu.MemorySpace.VMEM),
            pl.BlockSpec(memory_space=pltpu.MemorySpace.VMEM),
        ],
        out_specs=pl.BlockSpec(memory_space=pltpu.MemorySpace.VMEM),
    )(x1_2d, x2_2d)

    # v4.flatten(): row-major flatten of the (C, A1) block preserves order.
    return out2d.reshape(-1)


def _reference(x1, x2):
    # Pure-JAX reference mirroring the (adjusted) PyTorch forward.
    v1 = jnp.transpose(x1, (2, 0, 1))          # (C, A1, K)
    v2 = jnp.transpose(x2, (2, 1, 0))          # (C, K, A2f)
    v12 = jnp.matmul(v1, v2)                   # (C, A1, A2f)
    v4 = v12[:, :, 0] - v12[:, :, 2] - v12[:, :, 3] + v12[:, :, 5]
    return v4.reshape(-1)


if __name__ == "__main__":
    key = jax.random.PRNGKey(0)
    k1, k2 = jax.random.split(key)
    # Shapes consistent with the module's (N, 1, 3) inputs; first dim = 8 so
    # that the [:, :, 5] slice in the forward is in bounds.
    x1 = jax.random.normal(k1, (8, 1, 3), dtype=jnp.float32)
    x2 = jax.random.normal(k2, (8, 1, 3), dtype=jnp.float32)

    out = model_forward(x1, x2)
    jax.block_until_ready(out)

    ref = _reference(x1, x2)
    assert out.shape == ref.shape == (3 * 8,)
    assert jnp.allclose(out, ref, atol=1e-5, rtol=1e-5)

    print("KERNEL_OK")
</pallas_src>

<mosaic_0001>
module attributes {stable_mosaic.version = 11 : i64} {
  func.func @_model_kernel(%arg0: memref<8x3xf32, #tpu.memory_space<vmem>>, %arg1: memref<8x3xf32, #tpu.memory_space<vmem>>, %arg2: memref<3x8xf32, #tpu.memory_space<vmem>>) attributes {dimension_semantics = [], scalar_prefetch = 0 : i64, scratch_operands = 0 : i64, tpu.core_type = #tpu.core_type<tc>} {
    %c0 = arith.constant 0 : index
    %c0_0 = arith.constant 0 : index
    %0 = vector.load %arg1[%c0, %c0_0] : memref<8x3xf32, #tpu.memory_space<vmem>>, vector<1x3xf32>
    %c2 = arith.constant 2 : index
    %c0_1 = arith.constant 0 : index
    %1 = vector.load %arg1[%c2, %c0_1] : memref<8x3xf32, #tpu.memory_space<vmem>>, vector<1x3xf32>
    %2 = arith.subf %0, %1 : vector<1x3xf32>
    %c3 = arith.constant 3 : index
    %c0_2 = arith.constant 0 : index
    %3 = vector.load %arg1[%c3, %c0_2] : memref<8x3xf32, #tpu.memory_space<vmem>>, vector<1x3xf32>
    %4 = arith.subf %2, %3 : vector<1x3xf32>
    %c5 = arith.constant 5 : index
    %c0_3 = arith.constant 0 : index
    %5 = vector.load %arg1[%c5, %c0_3] : memref<8x3xf32, #tpu.memory_space<vmem>>, vector<1x3xf32>
    %6 = arith.addf %4, %5 : vector<1x3xf32>
    %c0_4 = arith.constant 0 : index
    %c0_5 = arith.constant 0 : index
    %7 = vector.load %arg0[%c0_4, %c0_5] : memref<8x3xf32, #tpu.memory_space<vmem>>, vector<8x3xf32>
    %8 = vector.broadcast %6 : vector<1x3xf32> to vector<8x3xf32>
    %9 = arith.mulf %7, %8 : vector<8x3xf32>
    %10 = tpu.transpose %9, [1, 0] : vector<8x3xf32> -> vector<3x8xf32>
    %c0_6 = arith.constant 0 : index
    %c0_7 = arith.constant 0 : index
    %11 = vector.load %arg2[%c0_6, %c0_7] : memref<3x8xf32, #tpu.memory_space<vmem>>, vector<3x8xf32>
    tpu.vector_store %arg2[%c0_6, %c0_7], %10 {strides = array<i32>} : memref<3x8xf32, #tpu.memory_space<vmem>>, vector<3x8xf32>,
    return
  }
}

</mosaic_0001>

<bundles_post_ra>
// kernel: tpu_custom_call.1
= control target key start
LH: loop header
LB: loop body
LE: loop exit
PB: predicated region body
PF: predicated region fallthrough
CT: control target
= control target key end

     0   :  { %v20_v3 = vlaneseq  ;;  %s142_s0 = inlined_call_operand.vmem [shape: f32[8,3], index: 0, kind: input, shape index: {}]   ;;  %s143_s1 = inlined_call_operand.vmem [shape: f32[8,3], index: 1, kind: input, shape index: {}]   ;;  %s144_s2 = inlined_call_operand.hbm [shape: f32[3,8], index: 2, kind: output, shape index: {}]  }
   0x1   :  { %v12_v0 = vld [vmem:[%s143_s1] sm:$0x1]  ;;  %v13_v1 = vld [vmem:[%s143_s1 + $0x2] sm:$0x1]  ;;  %v15_v2 = vld [vmem:[%s143_s1 + $0x3] sm:$0x1] }
   0x2   :  { %v14_v4 = vsub.f32 %v12_v0, %v13_v1 }
   0x3   :  { %7 = vsyncpa [#allocation3], 0  ;;  %v17_v5 = vld [vmem:[%s143_s1 + $0x5] sm:$0x1]  ;;  %v21_v6 = vshrl.u32 %v20_v3, 7  ;;  %s99_s19 = smov [#allocation2]  }
   0x4   :  { %v16_v7 = vsub.f32 %v14_v4, %v15_v2  ;;  %v19_v10 = vld [vmem:[%s142_s0] sm:$0xff]  ;;  %s65_s20 = sshll.u32 %s99_s19, 4  ;;  %vm57_vm0 = vcmask 59392   ;;  %s66_s20 = int_to_ptr.vmem [resolvable:$true] %s65_s20 }
   0x5   :  { %v22_v8 = vsub.s32 0, %v21_v6  ;;  %s75_s21 = scalar_lea.vmem %s66_s20, 64  ;;  %p80_p1 = scmp.lt.s32.totalorder %s66_s20, %s66_s20 }
   0x6   :  { %v18_v9 = vadd.f32 %v17_v5, %v16_v7  ;;  %p76_p0 = scmp.ne.s32.totalorder %s66_s20, %s75_s21  ;;  %p81_p2 = scmp.lt.s32.totalorder %s75_s21, %s75_s21 }
   0x8   :  { %v23_v11 = vrot.slane %v18_v9, %v22_v8  ;;  %p82_p3 = por %p81_p2, %p80_p1 }
   0xa   :  { %v24_v12 = vmul.f32 %v23_v11, %v19_v10  ;;  %p83_p4 = pnand %p82_p3, %p76_p0 }
   0xc   :  { %25 = vxpose.xlu0.b32.start.end [1/1] (short) (narrow) %v24_v12, 8 }
  0x8c   :  { %v41_v13 = vpop.trf.xlu0 }
  0x8d   :  { %58 = vst.msk [vmem:[#allocation2] sm:$0x7] %vm57_vm0, %v41_v13 }
  0x8e   :  { %86 = shalt.err (!%p83_p4)
}
  0x8f   :  { %s87_s0 = scalar_lea.hbm %s144_s2, 64 }
  0x90   :  { %p88_p5 = scmp.ne.s32.totalorder %s144_s2, %s87_s0  ;;  %p91_p6 = scmp.lt.u32.totalorder %s87_s0, %s144_s2 }
  0x92   :  { %p93_p7 = pnand %p91_p6, %p88_p5 }
  0x94   :  { %96 = shalt.err (!%p93_p7)
}
  0x95   :  { %68 = dma.vmem_to_hbm [thread:$0]  %s66_s20, 64, %s144_s2, [#allocation3]  }
  0x96   :  { %97 = dma.done.wait [#allocation3], 64  }
  0x97   :  { %98 = vsyncadd [#allocation3], 4294967232 }
  0x98   :  { %72 = vsyncpa [#allocation3], 1 }

</bundles_post_ra>
